<compile_context>
chip_gen: v7x
topology: tpu7x:2x2x1
jax: 0.10.0
libtpu: 0.0.40
codegen_flags: <defaults>
</compile_context>

<pallas_src>
import math

import jax
import jax.numpy as jnp
from jax.experimental import pallas as pl
from jax.experimental.pallas import tpu as pltpu


def _round_up(x, m):
    return (x + m - 1) // m * m


def mlp_kernel(x_ref, w1_ref, w2_ref, o_ref):
    """Fused MLP forward on one batch tile: relu(x @ W1) @ W2.

    x_ref : (tm, K) f32 VMEM   (K = n_in, unpadded; cast to bf16 on the VPU)
    w1_ref: (K,  H) bf16 VMEM  (pre-transposed: in x hidden, grid-invariant)
    w2_ref: (H,  N) bf16 VMEM  (pre-transposed: hidden x padded n_out, grid-invariant)
    o_ref : (tm, N) f32 VMEM
    """
    x = x_ref[...].astype(jnp.bfloat16)          # VPU cast, hidden under DMA
    h = jnp.dot(x, w1_ref[...], preferred_element_type=jnp.float32)   # MXU, f32 acc
    h = jnp.maximum(h, 0.0).astype(jnp.bfloat16)                      # ReLU on VPU
    o_ref[...] = jnp.dot(h, w2_ref[...], preferred_element_type=jnp.float32)


def prepare_params(w1, w2):
    """ONE-TIME weight prep (call at model init, NOT per forward call).

    w1: (hidden, n_in)  PyTorch nn.Linear layout (out, in)
    w2: (n_out, hidden)
    Returns bf16 weights in (in, out) layout; w2's output dim zero-padded to a
    lane multiple (10 -> 128). Zero padding is exact for bias-free Linear.
    """
    hidden, n_in = w1.shape
    n_out, hidden2 = w2.shape
    assert hidden == hidden2
    N = _round_up(n_out, 128)
    w1_t = w1.T.astype(jnp.bfloat16)                       # (784, 512), K unpadded
    w2_t = jnp.zeros((hidden, N), jnp.bfloat16).at[:, :n_out].set(
        w2.T.astype(jnp.bfloat16))                         # (512, 128)
    return w1_t, w2_t


def neural_network_forward(x_nchw, w1_t, w2_t, n_out):
    """Flatten input and run the fused Pallas MLP with pre-prepared weights.

    Returns (B, n_out) float32 logits.
    """
    B = x_nchw.shape[0]
    n_in = math.prod(x_nchw.shape[1:])
    K, hidden = w1_t.shape
    hidden2, N = w2_t.shape
    assert K == n_in and hidden == hidden2

    # nn.Flatten equivalent; x stays in its original dtype (f32) -- no extra copy.
    x2d = x_nchw.reshape(B, n_in)

    # Batch tiling policy (tm = sublane block size, multiple of 16 for bf16 packing):
    #   B <= 256      : one tile (per-call-latency regime)
    #   256 < B <=2048: two tiles so both v7x TensorCores get work
    #   B > 2048      : 1024-row tiles (amortize ~0.35us/step overhead, HBM roofline)
    if B <= 256:
        tm = max(_round_up(B, 16), 16)
        Bp = tm
    elif B <= 2048:
        tm = _round_up((B + 1) // 2, 16)
        Bp = 2 * tm
    else:
        tm = 1024
        Bp = _round_up(B, tm)

    # Pad the batch only when needed (zero rows are exact and sliced off below).
    if Bp != B:
        x2d = jnp.zeros((Bp, n_in), x2d.dtype).at[:B].set(x2d)

    grid = (Bp // tm,)
    flops = 2 * Bp * (K * hidden + hidden * N)
    bytes_accessed = (x2d.size * x2d.dtype.itemsize
                      + 2 * (w1_t.size + w2_t.size)
                      + 4 * Bp * N)
    vmem_limit = (8 << 20) if tm <= 256 else (32 << 20)

    out_p = pl.pallas_call(
        mlp_kernel,
        out_shape=jax.ShapeDtypeStruct((Bp, N), jnp.float32),
        grid_spec=pltpu.PrefetchScalarGridSpec(
            num_scalar_prefetch=0,
            grid=grid,
            in_specs=[
                # x: batch-tiled; K=784 is the full lane dim (legal full-dim block).
                pl.BlockSpec((tm, K), lambda i: (i, 0)),
                # Weights: constant index_maps -> VMEM-resident, never re-DMA'd.
                pl.BlockSpec((K, hidden), lambda i: (0, 0)),
                pl.BlockSpec((hidden, N), lambda i: (0, 0)),
            ],
            out_specs=pl.BlockSpec((tm, N), lambda i: (i, 0)),
        ),
        compiler_params=pltpu.CompilerParams(
            dimension_semantics=("parallel",),   # megacore-shard the batch axis
            vmem_limit_bytes=vmem_limit,
        ),
        cost_estimate=pl.CostEstimate(
            flops=flops, transcendentals=0, bytes_accessed=bytes_accessed),
    )(x2d, w1_t, w2_t)

    # Slice away batch / output padding.
    return out_p[:B, :n_out]


if __name__ == "__main__":
    # Shapes consistent with the module defaults:
    # n_in = 28*28 = 784, h_layer_widths = [512], n_out = 10, bias=False.
    B, C, H_img, W_img = 4, 1, 28, 28
    n_in = C * H_img * W_img
    hidden = 512
    n_out = 10

    key = jax.random.PRNGKey(0)
    k_x, k_w1, k_w2 = jax.random.split(key, 3)

    x = jax.random.normal(k_x, (B, C, H_img, W_img), dtype=jnp.float32)
    # Deterministic synthetic weights (PyTorch Linear layout: (out, in)).
    w1 = jax.random.normal(k_w1, (hidden, n_in), dtype=jnp.float32) * 0.05
    w2 = jax.random.normal(k_w2, (n_out, hidden), dtype=jnp.float32) * 0.05

    # Weight prep happens ONCE (model init), not in the per-call path.
    w1_t, w2_t = prepare_params(w1, w2)

    fwd = jax.jit(neural_network_forward, static_argnames=("n_out",))
    out = jax.block_until_ready(fwd(x, w1_t, w2_t, n_out=n_out))
    assert out.shape == (B, n_out)

    # Pure-JAX reference of the same bf16-feed / f32-accumulate pipeline.
    xb = x.reshape(B, n_in).astype(jnp.bfloat16).astype(jnp.float32)
    w1b = w1.astype(jnp.bfloat16).astype(jnp.float32)
    w2b = w2.astype(jnp.bfloat16).astype(jnp.float32)
    h_ref = jnp.maximum(xb @ w1b.T, 0.0).astype(jnp.bfloat16).astype(jnp.float32)
    ref = h_ref @ w2b.T
    assert jnp.allclose(out, ref, atol=2e-2, rtol=2e-2)

    print("KERNEL_OK")
</pallas_src>

<mosaic_0001>
module attributes {stable_mosaic.version = 11 : i64} {
  func.func @mlp_kernel(%arg0: i32, %arg1: memref<16x784xf32, #tpu.memory_space<vmem>>, %arg2: memref<784x512xbf16, #tpu.memory_space<vmem>>, %arg3: memref<512x128xbf16, #tpu.memory_space<vmem>>, %arg4: memref<16x128xf32, #tpu.memory_space<vmem>>) attributes {dimension_semantics = [#tpu.dimension_semantics<parallel>], iteration_bounds = array<i64: 1>, scalar_prefetch = 0 : i64, scratch_operands = 0 : i64, tpu.core_type = #tpu.core_type<tc>, window_params = [{transform_indices = @transform_0, window_bounds = array<i64: 16, 784>}, {pipeline_mode = #tpu.pipeline_mode<synchronous>, transform_indices = @transform_1, window_bounds = array<i64: 784, 512>}, {pipeline_mode = #tpu.pipeline_mode<synchronous>, transform_indices = @transform_2, window_bounds = array<i64: 512, 128>}, {transform_indices = @transform_3, window_bounds = array<i64: 16, 128>}]} {
    %c0 = arith.constant 0 : index
    %c0_0 = arith.constant 0 : index
    %0 = vector.load %arg1[%c0, %c0_0] : memref<16x784xf32, #tpu.memory_space<vmem>>, vector<16x784xf32>
    %1 = arith.truncf %0 : vector<16x784xf32> to vector<16x784xbf16>
    %c0_1 = arith.constant 0 : index
    %c0_2 = arith.constant 0 : index
    %2 = vector.load %arg2[%c0_1, %c0_2] : memref<784x512xbf16, #tpu.memory_space<vmem>>, vector<784x512xbf16>
    %cst = arith.constant dense<0.000000e+00> : vector<16x512xf32>
    %3 = tpu.matmul %1, %2, %cst {dimension_numbers = #tpu.dot_dimension_numbers<[1], [0], [0], [1], [0, 0, 1, 1], [], []>} : vector<16x784xbf16>, vector<784x512xbf16>, vector<16x512xf32> -> vector<16x512xf32>
    %cst_3 = arith.constant 0.000000e+00 : f32
    %4 = vector.broadcast %cst_3 : f32 to vector<16x512xf32>
    %5 = arith.maximumf %3, %4 : vector<16x512xf32>
    %6 = arith.truncf %5 : vector<16x512xf32> to vector<16x512xbf16>
    %c0_4 = arith.constant 0 : index
    %c0_5 = arith.constant 0 : index
    %7 = vector.load %arg3[%c0_4, %c0_5] : memref<512x128xbf16, #tpu.memory_space<vmem>>, vector<512x128xbf16>
    %cst_6 = arith.constant dense<0.000000e+00> : vector<16x128xf32>
    %8 = tpu.matmul %6, %7, %cst_6 {dimension_numbers = #tpu.dot_dimension_numbers<[1], [0], [0], [1], [0, 0, 1, 1], [], []>} : vector<16x512xbf16>, vector<512x128xbf16>, vector<16x128xf32> -> vector<16x128xf32>
    %c0_7 = arith.constant 0 : index
    %c0_8 = arith.constant 0 : index
    %9 = vector.load %arg4[%c0_7, %c0_8] : memref<16x128xf32, #tpu.memory_space<vmem>>, vector<16x128xf32>
    tpu.vector_store %arg4[%c0_7, %c0_8], %8 {strides = array<i32>} : memref<16x128xf32, #tpu.memory_space<vmem>>, vector<16x128xf32>,
    return
  }
  func.func @transform_0(%arg0: i32) -> (i32, i32) {
    %c0_i32 = arith.constant 0 : i32
    %c0_i32_0 = arith.constant 0 : i32
    return %arg0, %c0_i32 : i32, i32
  }
  func.func @transform_1(%arg0: i32) -> (i32, i32) {
    %c0_i32 = arith.constant 0 : i32
    %c0_i32_0 = arith.constant 0 : i32
    %c0_i32_1 = arith.constant 0 : i32
    return %c0_i32, %c0_i32_0 : i32, i32
  }
  func.func @transform_2(%arg0: i32) -> (i32, i32) {
    %c0_i32 = arith.constant 0 : i32
    %c0_i32_0 = arith.constant 0 : i32
    %c0_i32_1 = arith.constant 0 : i32
    return %c0_i32, %c0_i32_0 : i32, i32
  }
  func.func @transform_3(%arg0: i32) -> (i32, i32) {
    %c0_i32 = arith.constant 0 : i32
    %c0_i32_0 = arith.constant 0 : i32
    return %arg0, %c0_i32 : i32, i32
  }
}

</mosaic_0001>

<bundles_post_ra>
// kernel: neural_network_forward.1
= control target key start
LH: loop header
LB: loop body
LE: loop exit
PB: predicated region body
PF: predicated region fallthrough
CT: control target
= control target key end

     0   :  { %8 = vsyncpa [#allocation3], 0  ;;  %s2583_s12 = smov [#allocation2]   ;;  %s2763_s0 = inlined_call_operand.vmem [shape: f32[16,784], index: 0, kind: input, shape index: {}]   ;;  %s2764_s1 = inlined_call_operand.hbm [shape: bf16[784,512], index: 1, kind: input, shape index: {}]   ;;  %s2765_s2 = inlined_call_operand.vmem [shape: bf16[512,128], index: 2, kind: input, shape index: {}]   ;;  %s2766_s3 = inlined_call_operand.vmem [shape: f32[16,128], index: 3, kind: output, shape index: {}]  }
   0x1   :  { %s16_s13 = sshll.u32 %s2583_s12, 4  ;;  %s2559_s16 = scalar_lea.hbm %s2764_s1, 25088  ;;  %s17_s13 = int_to_ptr.vmem [resolvable:$true] %s16_s13 }
   0x2   :  { %p2560_p0 = scmp.ne.s32.totalorder %s2764_s1, %s2559_s16  ;;  %p2563_p1 = scmp.lt.u32.totalorder %s2559_s16, %s2764_s1 }
   0x4   :  { %p2565_p2 = pnand %p2563_p1, %p2560_p0 }
   0x6   :  { %2568 = shalt.err (!%p2565_p2)
}
   0x7   :  { %s2569_s21 = scalar_lea.vmem %s17_s13, 25088  ;;  %p2574_p4 = scmp.lt.s32.totalorder %s17_s13, %s17_s13 }
   0x8   :  { %p2570_p3 = scmp.ne.s32.totalorder %s17_s13, %s2569_s21  ;;  %p2575_p5 = scmp.lt.s32.totalorder %s2569_s21, %s2569_s21 }
   0xa   :  { %p2576_p6 = por %p2575_p5, %p2574_p4 }
   0xc   :  { %p2577_p7 = pnand %p2576_p6, %p2570_p3 }
   0xe   :  { %2580 = shalt.err (!%p2577_p7)
}
   0xf   :  { %s2584_s22 = smov 256   ;;  %s2585_s23 = smov 16  }
  0x10   :  { %22 = dma.hbm_to_vmem [thread:$0]  %s2764_s1, 25088, %s17_s13, [#allocation3], %s2584_s22, %s2584_s22, %s2585_s23  }
  0x11   :  { %2581 = dma.done.wait [#allocation3], 25088  }
  0x12   :  { %2582 = vsyncadd [#allocation3], 4294942208  ;;  %v2233_v0 = vld [vmem:[#allocation2 + $0x4] ss:$16 sps:$4 sm:$0xff]   ;;  %v2235_v1 = vld [vmem:[#allocation2 + $0xc] ss:$16 sps:$4 sm:$0xff]  }
  0x13   :  { %1230 = vmatprep.subr.bf16.mxu0 %v2233_v0  ;;  %v2237_v2 = vld [vmem:[#allocation2] ss:$16 sps:$4 sm:$0xff]   ;;  %v2238_v3 = vld [vmem:[#allocation2 + $0x8] ss:$16 sps:$4 sm:$0xff]   ;;  %1402 = vmatprep.subr.bf16.mxu1 %v2235_v1  ;;  %v2239_v4 = vld [vmem:[#allocation2 + $0x24] ss:$16 sps:$4 sm:$0xff]  }
  0x14   :  { %1231 = vmatpush1.bf16.msra.mxu0 %v2237_v2  ;;  %1403 = vmatpush1.bf16.msra.mxu1 %v2238_v3  ;;  %v2241_v5 = vld [vmem:[#allocation2 + $0x2c] ss:$16 sps:$4 sm:$0xff]   ;;  %v2243_v6 = vld [vmem:[#allocation2 + $0x20] ss:$16 sps:$4 sm:$0xff]   ;;  %v2244_v7 = vld [vmem:[#allocation2 + $0x28] ss:$16 sps:$4 sm:$0xff]  }
  0x15   :  { %1232 = vmatprep.subr.bf16.mxu0 %v2239_v4  ;;  %1404 = vmatprep.subr.bf16.mxu1 %v2241_v5  ;;  %v2245_v8 = vld [vmem:[#allocation2 + $0x44] ss:$16 sps:$4 sm:$0xff]   ;;  %v2247_v9 = vld [vmem:[#allocation2 + $0x4c] ss:$16 sps:$4 sm:$0xff]   ;;  %v2249_v10 = vld [vmem:[#allocation2 + $0x40] ss:$16 sps:$4 sm:$0xff]  }
  0x16   :  { %v2250_v11 = vld [vmem:[#allocation2 + $0x48] ss:$16 sps:$4 sm:$0xff]   ;;  %v2251_v12 = vld [vmem:[#allocation2 + $0x64] ss:$16 sps:$4 sm:$0xff]   ;;  %v2253_v13 = vld [vmem:[#allocation2 + $0x6c] ss:$16 sps:$4 sm:$0xff]  }
  0x17   :  { %v2255_v14 = vld [vmem:[#allocation2 + $0x60] ss:$16 sps:$4 sm:$0xff]   ;;  %v2256_v15 = vld [vmem:[#allocation2 + $0x68] ss:$16 sps:$4 sm:$0xff]   ;;  %v2257_v16 = vld [vmem:[#allocation2 + $0x84] ss:$16 sps:$4 sm:$0xff]  }
  0x18   :  { %1233 = vmatpush1.bf16.msra.mxu0 %v2243_v6  ;;  %1405 = vmatpush1.bf16.msra.mxu1 %v2244_v7  ;;  %v2259_v17 = vld [vmem:[#allocation2 + $0x8c] ss:$16 sps:$4 sm:$0xff]   ;;  %v2261_v18 = vld [vmem:[#allocation2 + $0x80] ss:$16 sps:$4 sm:$0xff]   ;;  %v2262_v19 = vld [vmem:[#allocation2 + $0x88] ss:$16 sps:$4 sm:$0xff]  }
  0x19   :  { %1234 = vmatprep.subr.bf16.mxu0 %v2245_v8  ;;  %1406 = vmatprep.subr.bf16.mxu1 %v2247_v9  ;;  %v2263_v20 = vld [vmem:[#allocation2 + $0xa4] ss:$16 sps:$4 sm:$0xff]   ;;  %v2265_v21 = vld [vmem:[#allocation2 + $0xac] ss:$16 sps:$4 sm:$0xff]   ;;  %v2267_v22 = vld [vmem:[#allocation2 + $0xa0] ss:$16 sps:$4 sm:$0xff]  }
  0x1a   :  { %v2268_v23 = vld [vmem:[#allocation2 + $0xa8] ss:$16 sps:$4 sm:$0xff]   ;;  %v2269_v24 = vld [vmem:[#allocation2 + $0xc4] ss:$16 sps:$4 sm:$0xff]   ;;  %v2271_v25 = vld [vmem:[#allocation2 + $0xcc] ss:$16 sps:$4 sm:$0xff]  }
  0x1b   :  { %v2273_v26 = vld [vmem:[#allocation2 + $0xc0] ss:$16 sps:$4 sm:$0xff]   ;;  %v2274_v27 = vld [vmem:[#allocation2 + $0xc8] ss:$16 sps:$4 sm:$0xff]   ;;  %v2275_v28 = vld [vmem:[#allocation2 + $0xe4] ss:$16 sps:$4 sm:$0xff]  }
  0x1c   :  { %1235 = vmatpush1.bf16.msra.mxu0 %v2249_v10  ;;  %1407 = vmatpush1.bf16.msra.mxu1 %v2250_v11  ;;  %v2277_v29 = vld [vmem:[#allocation2 + $0xec] ss:$16 sps:$4 sm:$0xff]   ;;  %v2279_v30 = vld [vmem:[#allocation2 + $0xe0] ss:$16 sps:$4 sm:$0xff]   ;;  %v2280_v31 = vld [vmem:[#allocation2 + $0xe8] ss:$16 sps:$4 sm:$0xff]  }
  0x1d   :  { %1236 = vmatprep.subr.bf16.mxu0 %v2251_v12  ;;  %1408 = vmatprep.subr.bf16.mxu1 %v2253_v13  ;;  %v2281_v32 = vld [vmem:[#allocation2 + $0x104] ss:$16 sps:$4 sm:$0xff]   ;;  %v2283_v33 = vld [vmem:[#allocation2 + $0x10c] ss:$16 sps:$4 sm:$0xff]   ;;  %v2285_v34 = vld [vmem:[#allocation2 + $0x100] ss:$16 sps:$4 sm:$0xff]  }
  0x1e   :  { %v2286_v35 = vld [vmem:[#allocation2 + $0x108] ss:$16 sps:$4 sm:$0xff]   ;;  %v2287_v36 = vld [vmem:[#allocation2 + $0x124] ss:$16 sps:$4 sm:$0xff]   ;;  %v2289_v37 = vld [vmem:[#allocation2 + $0x12c] ss:$16 sps:$4 sm:$0xff]  }
  0x1f   :  { %v2291_v38 = vld [vmem:[#allocation2 + $0x120] ss:$16 sps:$4 sm:$0xff]   ;;  %v2292_v39 = vld [vmem:[#allocation2 + $0x128] ss:$16 sps:$4 sm:$0xff]   ;;  %v2293_v40 = vld [vmem:[#allocation2 + $0x144] ss:$16 sps:$4 sm:$0xff]  }
  0x20   :  { %1237 = vmatpush1.bf16.msra.mxu0 %v2255_v14  ;;  %1409 = vmatpush1.bf16.msra.mxu1 %v2256_v15  ;;  %v2295_v41 = vld [vmem:[#allocation2 + $0x14c] ss:$16 sps:$4 sm:$0xff]   ;;  %v2297_v42 = vld [vmem:[#allocation2 + $0x140] ss:$16 sps:$4 sm:$0xff]   ;;  %v2298_v43 = vld [vmem:[#allocation2 + $0x148] ss:$16 sps:$4 sm:$0xff]  }
  0x21   :  { %1238 = vmatprep.subr.bf16.mxu0 %v2257_v16  ;;  %1410 = vmatprep.subr.bf16.mxu1 %v2259_v17  ;;  %v2299_v44 = vld [vmem:[#allocation2 + $0x164] ss:$16 sps:$4 sm:$0xff]   ;;  %v2301_v45 = vld [vmem:[#allocation2 + $0x16c] ss:$16 sps:$4 sm:$0xff]   ;;  %v2303_v48 = vld [vmem:[#allocation2 + $0x160] ss:$16 sps:$4 sm:$0xff]  }
  0x22   :  { %v30_v46 = vld [vmem:[%s2763_s0 + $0x8] sm:$0xff]  ;;  %v37_v47 = vld [vmem:[%s2763_s0 + $0x40] sm:$0xff]  ;;  %v36_v5 = vld [vmem:[%s2763_s0 + $0x38] sm:$0xff]  ;;  %vm1226_vm0 = vcmask 130048  }
  0x23   :  { %v2304_v49 = vld [vmem:[#allocation2 + $0x168] ss:$16 sps:$4 sm:$0xff]   ;;  %v44_v50 = vpack.c.bf16 %v37_v47, %v30_v46  ;;  %v2305_v51 = vld [vmem:[#allocation2 + $0x184] ss:$16 sps:$4 sm:$0xff]   ;;  %v2307_v52 = vld [vmem:[#allocation2 + $0x18c] ss:$16 sps:$4 sm:$0xff]  }
  0x24   :  { %1239 = vmatpush1.bf16.msra.mxu0 %v2261_v18  ;;  %1411 = vmatpush1.bf16.msra.mxu1 %v2262_v19  ;;  %v2309_v53 = vld [vmem:[#allocation2 + $0x180] ss:$16 sps:$4 sm:$0xff]   ;;  %v2310_v54 = vld [vmem:[#allocation2 + $0x188] ss:$16 sps:$4 sm:$0xff]   ;;  %v2311_v55 = vld [vmem:[#allocation2 + $0x1a4] ss:$16 sps:$4 sm:$0xff]  }
  0x25   :  { %1240 = vmatprep.subr.bf16.mxu0 %v2263_v20  ;;  %1412 = vmatprep.subr.bf16.mxu1 %v2265_v21  ;;  %v2313_v56 = vld [vmem:[#allocation2 + $0x1ac] ss:$16 sps:$4 sm:$0xff]   ;;  %v2315_v57 = vld [vmem:[#allocation2 + $0x1a0] ss:$16 sps:$4 sm:$0xff]   ;;  %v2316_v58 = vld [vmem:[#allocation2 + $0x1a8] ss:$16 sps:$4 sm:$0xff]  }
  0x26   :  { %1262 = vmatprep.mubr.bf16.mxu0 %v44_v50  ;;  %1434 = vmatprep.mubr.bf16.mxu1 %v44_v50  ;;  %v2317_v59 = vld [vmem:[#allocation2 + $0x1c4] ss:$16 sps:$4 sm:$0xff]   ;;  %v2319_v60 = vld [vmem:[#allocation2 + $0x1cc] ss:$16 sps:$4 sm:$0xff]   ;;  %v2321_v61 = vld [vmem:[#allocation2 + $0x1c0] ss:$16 sps:$4 sm:$0xff]  }
  0x27   :  { %v2322_v62 = vld [vmem:[#allocation2 + $0x1c8] ss:$16 sps:$4 sm:$0xff]   ;;  %v2323_v63 = vld [vmem:[#allocation2 + $0x1e4] ss:$16 sps:$4 sm:$0xff]   ;;  %v2325_v0 = vld [vmem:[#allocation2 + $0x1ec] ss:$16 sps:$4 sm:$0xff]  }
  0x28   :  { %1241 = vmatpush1.bf16.msra.mxu0 %v2267_v22  ;;  %1413 = vmatpush1.bf16.msra.mxu1 %v2268_v23  ;;  %v2327_v1 = vld [vmem:[#allocation2 + $0x1e0] ss:$16 sps:$4 sm:$0xff]   ;;  %v2328_v2 = vld [vmem:[#allocation2 + $0x1e8] ss:$16 sps:$4 sm:$0xff]   ;;  %v2331_v3 = vld [vmem:[#allocation2 + $0x204] ss:$16 sps:$4 sm:$0xff]  }
  0x29   :  { %1242 = vmatprep.subr.bf16.mxu0 %v2269_v24  ;;  %1414 = vmatprep.subr.bf16.mxu1 %v2271_v25  ;;  %v29_v4 = vld [vmem:[%s2763_s0] sm:$0xff]  ;;  %v2334_v6 = vld [vmem:[#allocation2 + $0x20c] ss:$16 sps:$4 sm:$0xff]   ;;  %v2332_v8 = vld [vmem:[#allocation2 + $0x208] ss:$16 sps:$4 sm:$0xff]  }
  0x2a   :  { %v2329_v7 = vld [vmem:[#allocation2 + $0x200] ss:$16 sps:$4 sm:$0xff]   ;;  %v43_v9 = vpack.c.bf16 %v36_v5, %v29_v4  ;;  %v2337_v10 = vld [vmem:[#allocation2 + $0x224] ss:$16 sps:$4 sm:$0xff]   ;;  %v2340_v11 = vld [vmem:[#allocation2 + $0x22c] ss:$16 sps:$4 sm:$0xff]  }
  0x2b   :  { %v2335_v12 = vld [vmem:[#allocation2 + $0x220] ss:$16 sps:$4 sm:$0xff]   ;;  %v2338_v13 = vld [vmem:[#allocation2 + $0x228] ss:$16 sps:$4 sm:$0xff]   ;;  %v2343_v14 = vld [vmem:[#allocation2 + $0x244] ss:$16 sps:$4 sm:$0xff]  }
  0x2c   :  { %1243 = vmatpush1.bf16.msra.mxu0 %v2273_v26  ;;  %1415 = vmatpush1.bf16.msra.mxu1 %v2274_v27  ;;  %v2346_v15 = vld [vmem:[#allocation2 + $0x24c] ss:$16 sps:$4 sm:$0xff]   ;;  %v2341_v16 = vld [vmem:[#allocation2 + $0x240] ss:$16 sps:$4 sm:$0xff]   ;;  %v2344_v17 = vld [vmem:[#allocation2 + $0x248] ss:$16 sps:$4 sm:$0xff]  }
  0x2d   :  { %1244 = vmatprep.subr.bf16.mxu0 %v2275_v28  ;;  %1416 = vmatprep.subr.bf16.mxu1 %v2277_v29  ;;  %v2349_v18 = vld [vmem:[#allocation2 + $0x264] ss:$16 sps:$4 sm:$0xff]   ;;  %v2352_v19 = vld [vmem:[#allocation2 + $0x26c] ss:$16 sps:$4 sm:$0xff]   ;;  %v2347_v20 = vld [vmem:[#allocation2 + $0x260] ss:$16 sps:$4 sm:$0xff]  }
  0x2e   :  { %v2350_v21 = vld [vmem:[#allocation2 + $0x268] ss:$16 sps:$4 sm:$0xff]   ;;  %v2355_v22 = vld [vmem:[#allocation2 + $0x284] ss:$16 sps:$4 sm:$0xff]   ;;  %v2358_v23 = vld [vmem:[#allocation2 + $0x28c] ss:$16 sps:$4 sm:$0xff]  }
  0x2f   :  { %v2353_v24 = vld [vmem:[#allocation2 + $0x280] ss:$16 sps:$4 sm:$0xff]   ;;  %v2356_v25 = vld [vmem:[#allocation2 + $0x288] ss:$16 sps:$4 sm:$0xff]   ;;  %v2361_v26 = vld [vmem:[#allocation2 + $0x2a4] ss:$16 sps:$4 sm:$0xff]  }
  0x30   :  { %1245 = vmatpush1.bf16.msra.mxu0 %v2279_v30  ;;  %1417 = vmatpush1.bf16.msra.mxu1 %v2280_v31  ;;  %v2364_v27 = vld [vmem:[#allocation2 + $0x2ac] ss:$16 sps:$4 sm:$0xff]   ;;  %v2359_v28 = vld [vmem:[#allocation2 + $0x2a0] ss:$16 sps:$4 sm:$0xff]   ;;  %v2362_v29 = vld [vmem:[#allocation2 + $0x2a8] ss:$16 sps:$4 sm:$0xff]  }
  0x31   :  { %1246 = vmatprep.subr.bf16.mxu0 %v2281_v32  ;;  %1418 = vmatprep.subr.bf16.mxu1 %v2283_v33  ;;  %v2367_v30 = vld [vmem:[#allocation2 + $0x2c4] ss:$16 sps:$4 sm:$0xff]   ;;  %v2370_v31 = vld [vmem:[#allocation2 + $0x2cc] ss:$16 sps:$4 sm:$0xff]   ;;  %v2383_v47 = vld [vmem:[#allocation2 + $0x320] ss:$16 sps:$4 sm:$0xff]  }
  0x32   :  { %v32_v32 = vld [vmem:[%s2763_s0 + $0x18] sm:$0xff]  ;;  %v39_v33 = vld [vmem:[%s2763_s0 + $0x50] sm:$0xff] }
  0x33   :  { %v2388_v46 = vld [vmem:[#allocation2 + $0x32c] ss:$16 sps:$4 sm:$0xff]   ;;  %v2416_v4 = vld [vmem:[#allocation2 + $0x3c8] ss:$16 sps:$4 sm:$0xff]   ;;  %v2421_v5 = vld [vmem:[#allocation2 + $0x3e4] ss:$16 sps:$4 sm:$0xff]  }
  0x34   :  { %1247 = vmatpush1.bf16.msra.mxu0 %v2285_v34  ;;  %1419 = vmatpush1.bf16.msra.mxu1 %v2286_v35  ;;  %v2365_v34 = vld [vmem:[#allocation2 + $0x2c0] ss:$16 sps:$4 sm:$0xff]   ;;  %v2368_v35 = vld [vmem:[#allocation2 + $0x2c8] ss:$16 sps:$4 sm:$0xff]   ;;  %v2394_v50 = vld [vmem:[#allocation2 + $0x34c] ss:$16 sps:$4 sm:$0xff]  }
  0x35   :  { %1248 = vmatprep.subr.bf16.mxu0 %v2287_v36  ;;  %1420 = vmatprep.subr.bf16.mxu1 %v2289_v37  ;;  %v46_v36 = vpack.c.bf16 %v39_v33, %v32_v32  ;;  %v2373_v37 = vld [vmem:[#allocation2 + $0x2e4] ss:$16 sps:$4 sm:$0xff]   ;;  %v2454_v32 = vld [vmem:[#allocation2 + $0x48c] ss:$16 sps:$4 sm:$0xff]   ;;  %v2449_v33 = vld [vmem:[#allocation2 + $0x480] ss:$16 sps:$4 sm:$0xff]  }
  0x38   :  { %1249 = vmatpush1.bf16.msra.mxu0 %v2291_v38  ;;  %1421 = vmatpush1.bf16.msra.mxu1 %v2292_v39  ;;  %v2376_v38 = vld [vmem:[#allocation2 + $0x2ec] ss:$16 sps:$4 sm:$0xff]   ;;  %v2371_v39 = vld [vmem:[#allocation2 + $0x2e0] ss:$16 sps:$4 sm:$0xff]  }
  0x39   :  { %1250 = vmatprep.subr.bf16.mxu0 %v2293_v40  ;;  %1422 = vmatprep.subr.bf16.mxu1 %v2295_v41  ;;  %v2374_v40 = vld [vmem:[#allocation2 + $0x2e8] ss:$16 sps:$4 sm:$0xff]   ;;  %v2379_v41 = vld [vmem:[#allocation2 + $0x304] ss:$16 sps:$4 sm:$0xff]  }
  0x3c   :  { %1251 = vmatpush1.bf16.msra.mxu0 %v2297_v42  ;;  %1423 = vmatpush1.bf16.msra.mxu1 %v2298_v43  ;;  %v2382_v42 = vld [vmem:[#allocation2 + $0x30c] ss:$16 sps:$4 sm:$0xff]   ;;  %v2377_v43 = vld [vmem:[#allocation2 + $0x300] ss:$16 sps:$4 sm:$0xff]  }
  0x3d   :  { %1252 = vmatprep.subr.bf16.mxu0 %v2299_v44  ;;  %1424 = vmatprep.subr.bf16.mxu1 %v2301_v45  ;;  %v2380_v44 = vld [vmem:[#allocation2 + $0x308] ss:$16 sps:$4 sm:$0xff]   ;;  %v2385_v45 = vld [vmem:[#allocation2 + $0x324] ss:$16 sps:$4 sm:$0xff]  }
  0x40   :  { %1253 = vmatpush1.bf16.msra.mxu0 %v2303_v48  ;;  %1425 = vmatpush1.bf16.msra.mxu1 %v2304_v49  ;;  %v2386_v48 = vld [vmem:[#allocation2 + $0x328] ss:$16 sps:$4 sm:$0xff]   ;;  %v2391_v49 = vld [vmem:[#allocation2 + $0x344] ss:$16 sps:$4 sm:$0xff]  }
  0x41   :  { %1254 = vmatprep.subr.bf16.mxu0 %v2305_v51  ;;  %1426 = vmatprep.subr.bf16.mxu1 %v2307_v52  ;;  %v2389_v51 = vld [vmem:[#allocation2 + $0x340] ss:$16 sps:$4 sm:$0xff]   ;;  %v2392_v52 = vld [vmem:[#allocation2 + $0x348] ss:$16 sps:$4 sm:$0xff]  }
  0x44   :  { %1255 = vmatpush1.bf16.msra.mxu0 %v2309_v53  ;;  %1427 = vmatpush1.bf16.msra.mxu1 %v2310_v54  ;;  %v2397_v53 = vld [vmem:[#allocation2 + $0x364] ss:$16 sps:$4 sm:$0xff]   ;;  %v2400_v54 = vld [vmem:[#allocation2 + $0x36c] ss:$16 sps:$4 sm:$0xff]  }
  0x45   :  { %1256 = vmatprep.subr.bf16.mxu0 %v2311_v55  ;;  %1428 = vmatprep.subr.bf16.mxu1 %v2313_v56  ;;  %v2395_v55 = vld [vmem:[#allocation2 + $0x360] ss:$16 sps:$4 sm:$0xff]   ;;  %v2398_v56 = vld [vmem:[#allocation2 + $0x368] ss:$16 sps:$4 sm:$0xff]  }
  0x48   :  { %1257 = vmatpush1.bf16.msra.mxu0 %v2315_v57  ;;  %1429 = vmatpush1.bf16.msra.mxu1 %v2316_v58  ;;  %v2403_v57 = vld [vmem:[#allocation2 + $0x384] ss:$16 sps:$4 sm:$0xff]   ;;  %v2406_v58 = vld [vmem:[#allocation2 + $0x38c] ss:$16 sps:$4 sm:$0xff]  }
  0x49   :  { %1258 = vmatprep.subr.bf16.mxu0 %v2317_v59  ;;  %1430 = vmatprep.subr.bf16.mxu1 %v2319_v60  ;;  %v2401_v59 = vld [vmem:[#allocation2 + $0x380] ss:$16 sps:$4 sm:$0xff]   ;;  %v2404_v60 = vld [vmem:[#allocation2 + $0x388] ss:$16 sps:$4 sm:$0xff]  }
  0x4c   :  { %1259 = vmatpush1.bf16.msra.mxu0 %v2321_v61  ;;  %1431 = vmatpush1.bf16.msra.mxu1 %v2322_v62  ;;  %v2409_v61 = vld [vmem:[#allocation2 + $0x3a4] ss:$16 sps:$4 sm:$0xff]   ;;  %v2412_v62 = vld [vmem:[#allocation2 + $0x3ac] ss:$16 sps:$4 sm:$0xff]  }
  0x4d   :  { %1260 = vmatprep.subr.bf16.mxu0 %v2323_v63  ;;  %1432 = vmatprep.subr.bf16.mxu1 %v2325_v0  ;;  %v2407_v63 = vld [vmem:[#allocation2 + $0x3a0] ss:$16 sps:$4 sm:$0xff]   ;;  %v2410_v0 = vld [vmem:[#allocation2 + $0x3a8] ss:$16 sps:$4 sm:$0xff]  }
  0x50   :  { %1261 = vmatpush1.bf16.msra.mxu0 %v2327_v1  ;;  %1433 = vmatpush1.bf16.msra.mxu1 %v2328_v2  ;;  %v2415_v1 = vld [vmem:[#allocation2 + $0x3c4] ss:$16 sps:$4 sm:$0xff]   ;;  %v2418_v2 = vld [vmem:[#allocation2 + $0x3cc] ss:$16 sps:$4 sm:$0xff]  }
  0x51   :  { %1273 = vmatprep.subr.bf16.mxu0 %v2331_v3  ;;  %1445 = vmatprep.subr.bf16.mxu1 %v2334_v6  ;;  %v2413_v3 = vld [vmem:[#allocation2 + $0x3c0] ss:$16 sps:$4 sm:$0xff]   ;;  %v2424_v6 = vld [vmem:[#allocation2 + $0x3ec] ss:$16 sps:$4 sm:$0xff]  }
  0x53   :  { %1263 = vmatmul.mubr.bf16.vlgmr.msra.gmra.mrb[0].mxu0 %v43_v9  ;;  %1435 = vmatmul.mubr.bf16.vlgmr.msra.gmra.mrb[0].mxu1 %v43_v9  ;;  %v2427_v9 = vld [vmem:[#allocation2 + $0x404] ss:$16 sps:$4 sm:$0xff]  }
  0x54   :  { %1274 = vmatpush1.bf16.msra.mxu0 %v2329_v7  ;;  %1446 = vmatpush1.bf16.msra.mxu1 %v2332_v8  ;;  %v2419_v7 = vld [vmem:[#allocation2 + $0x3e0] ss:$16 sps:$4 sm:$0xff]   ;;  %v2422_v8 = vld [vmem:[#allocation2 + $0x3e8] ss:$16 sps:$4 sm:$0xff]  }
  0x55   :  { %1275 = vmatprep.subr.bf16.mxu0 %v2337_v10  ;;  %1447 = vmatprep.subr.bf16.mxu1 %v2340_v11  ;;  %v31_v10 = vld [vmem:[%s2763_s0 + $0x10] sm:$0xff]  ;;  %v38_v11 = vld [vmem:[%s2763_s0 + $0x48] sm:$0xff] }
  0x56   :  { %1305 = vmatprep.mubr.bf16.mxu0 %v46_v36  ;;  %1477 = vmatprep.mubr.bf16.mxu1 %v46_v36  ;;  %v2460_v36 = vld [vmem:[#allocation2 + $0x4ac] ss:$16 sps:$4 sm:$0xff]  }
  0x58   :  { %1276 = vmatpush1.bf16.msra.mxu0 %v2335_v12  ;;  %1448 = vmatpush1.bf16.msra.mxu1 %v2338_v13  ;;  %v2430_v12 = vld [vmem:[#allocation2 + $0x40c] ss:$16 sps:$4 sm:$0xff]   ;;  %v2425_v13 = vld [vmem:[#allocation2 + $0x400] ss:$16 sps:$4 sm:$0xff]  }
  0x59   :  { %1277 = vmatprep.subr.bf16.mxu0 %v2343_v14  ;;  %1449 = vmatprep.subr.bf16.mxu1 %v2346_v15  ;;  %v2428_v14 = vld [vmem:[#allocation2 + $0x408] ss:$16 sps:$4 sm:$0xff]   ;;  %v45_v15 = vpack.c.bf16 %v38_v11, %v31_v10  ;;  %v2517_v11 = vld [vmem:[#allocation2 + $0x5e4] ss:$16 sps:$4 sm:$0xff]  }
  0x5a   :  { %v2512_v10 = vld [vmem:[#allocation2 + $0x5c8] ss:$16 sps:$4 sm:$0xff]  }
  0x5c   :  { %1278 = vmatpush1.bf16.msra.mxu0 %v2341_v16  ;;  %1450 = vmatpush1.bf16.msra.mxu1 %v2344_v17  ;;  %v2433_v16 = vld [vmem:[#allocation2 + $0x424] ss:$16 sps:$4 sm:$0xff]   ;;  %v2436_v17 = vld [vmem:[#allocation2 + $0x42c] ss:$16 sps:$4 sm:$0xff]  }
  0x5d   :  { %1279 = vmatprep.subr.bf16.mxu0 %v2349_v18  ;;  %1451 = vmatprep.subr.bf16.mxu1 %v2352_v19  ;;  %v34_v18 = vld [vmem:[%s2763_s0 + $0x28] sm:$0xff]  ;;  %v2431_v19 = vld [vmem:[#allocation2 + $0x420] ss:$16 sps:$4 sm:$0xff]  }
  0x60   :  { %1280 = vmatpush1.bf16.msra.mxu0 %v2347_v20  ;;  %1452 = vmatpush1.bf16.msra.mxu1 %v2350_v21  ;;  %v2434_v20 = vld [vmem:[#allocation2 + $0x428] ss:$16 sps:$4 sm:$0xff]   ;;  %v41_v21 = vld [vmem:[%s2763_s0 + $0x60] sm:$0xff] }
  0x61   :  { %1281 = vmatprep.subr.bf16.mxu0 %v2355_v22  ;;  %1453 = vmatprep.subr.bf16.mxu1 %v2358_v23  ;;  %v2439_v22 = vld [vmem:[#allocation2 + $0x444] ss:$16 sps:$4 sm:$0xff]   ;;  %v48_v23 = vpack.c.bf16 %v41_v21, %v34_v18  ;;  %v2526_v18 = vld [vmem:[#allocation2 + $0x60c] ss:$16 sps:$4 sm:$0xff]   ;;  %v2524_v21 = vld [vmem:[#allocation2 + $0x608] ss:$16 sps:$4 sm:$0xff]  }
  0x64   :  { %1282 = vmatpush1.bf16.msra.mxu0 %v2353_v24  ;;  %1454 = vmatpush1.bf16.msra.mxu1 %v2356_v25  ;;  %v2442_v24 = vld [vmem:[#allocation2 + $0x44c] ss:$16 sps:$4 sm:$0xff]   ;;  %v2437_v25 = vld [vmem:[#allocation2 + $0x440] ss:$16 sps:$4 sm:$0xff]  }
  0x65   :  { %1283 = vmatprep.subr.bf16.mxu0 %v2361_v26  ;;  %1455 = vmatprep.subr.bf16.mxu1 %v2364_v27  ;;  %v2440_v26 = vld [vmem:[#allocation2 + $0x448] ss:$16 sps:$4 sm:$0xff]   ;;  %v2445_v27 = vld [vmem:[#allocation2 + $0x464] ss:$16 sps:$4 sm:$0xff]  }
  0x68   :  { %1284 = vmatpush1.bf16.msra.mxu0 %v2359_v28  ;;  %1456 = vmatpush1.bf16.msra.mxu1 %v2362_v29  ;;  %v2448_v28 = vld [vmem:[#allocation2 + $0x46c] ss:$16 sps:$4 sm:$0xff]   ;;  %v2443_v29 = vld [vmem:[#allocation2 + $0x460] ss:$16 sps:$4 sm:$0xff]  }
  0x69   :  { %1285 = vmatprep.subr.bf16.mxu0 %v2367_v30  ;;  %1457 = vmatprep.subr.bf16.mxu1 %v2370_v31  ;;  %v2446_v30 = vld [vmem:[#allocation2 + $0x468] ss:$16 sps:$4 sm:$0xff]   ;;  %v2451_v31 = vld [vmem:[#allocation2 + $0x484] ss:$16 sps:$4 sm:$0xff]  }
  0x6c   :  { %1286 = vmatpush1.bf16.msra.mxu0 %v2365_v34  ;;  %1458 = vmatpush1.bf16.msra.mxu1 %v2368_v35  ;;  %v2452_v34 = vld [vmem:[#allocation2 + $0x488] ss:$16 sps:$4 sm:$0xff]   ;;  %v2457_v35 = vld [vmem:[#allocation2 + $0x4a4] ss:$16 sps:$4 sm:$0xff]  }
  0x6d   :  { %1287 = vmatprep.subr.bf16.mxu0 %v2373_v37  ;;  %1459 = vmatprep.subr.bf16.mxu1 %v2376_v38  ;;  %v2455_v37 = vld [vmem:[#allocation2 + $0x4a0] ss:$16 sps:$4 sm:$0xff]   ;;  %v2458_v38 = vld [vmem:[#allocation2 + $0x4a8] ss:$16 sps:$4 sm:$0xff]  }
  0x70   :  { %1288 = vmatpush1.bf16.msra.mxu0 %v2371_v39  ;;  %1460 = vmatpush1.bf16.msra.mxu1 %v2374_v40  ;;  %v2463_v39 = vld [vmem:[#allocation2 + $0x4c4] ss:$16 sps:$4 sm:$0xff]   ;;  %v2466_v40 = vld [vmem:[#allocation2 + $0x4cc] ss:$16 sps:$4 sm:$0xff]  }
  0x71   :  { %1289 = vmatprep.subr.bf16.mxu0 %v2379_v41  ;;  %1461 = vmatprep.subr.bf16.mxu1 %v2382_v42  ;;  %v2461_v41 = vld [vmem:[#allocation2 + $0x4c0] ss:$16 sps:$4 sm:$0xff]   ;;  %v2464_v42 = vld [vmem:[#allocation2 + $0x4c8] ss:$16 sps:$4 sm:$0xff]  }
  0x74   :  { %1290 = vmatpush1.bf16.msra.mxu0 %v2377_v43  ;;  %1462 = vmatpush1.bf16.msra.mxu1 %v2380_v44  ;;  %v2469_v43 = vld [vmem:[#allocation2 + $0x4e4] ss:$16 sps:$4 sm:$0xff]   ;;  %v2472_v44 = vld [vmem:[#allocation2 + $0x4ec] ss:$16 sps:$4 sm:$0xff]  }
  0x75   :  { %1291 = vmatprep.subr.bf16.mxu0 %v2385_v45  ;;  %1463 = vmatprep.subr.bf16.mxu1 %v2388_v46  ;;  %v2467_v45 = vld [vmem:[#allocation2 + $0x4e0] ss:$16 sps:$4 sm:$0xff]   ;;  %v2470_v46 = vld [vmem:[#allocation2 + $0x4e8] ss:$16 sps:$4 sm:$0xff]  }
  0x78   :  { %1292 = vmatpush1.bf16.msra.mxu0 %v2383_v47  ;;  %1464 = vmatpush1.bf16.msra.mxu1 %v2386_v48  ;;  %v2475_v47 = vld [vmem:[#allocation2 + $0x504] ss:$16 sps:$4 sm:$0xff]   ;;  %v2478_v48 = vld [vmem:[#allocation2 + $0x50c] ss:$16 sps:$4 sm:$0xff]  }
  0x79   :  { %1293 = vmatprep.subr.bf16.mxu0 %v2391_v49  ;;  %1465 = vmatprep.subr.bf16.mxu1 %v2394_v50  ;;  %v2473_v49 = vld [vmem:[#allocation2 + $0x500] ss:$16 sps:$4 sm:$0xff]   ;;  %v2476_v50 = vld [vmem:[#allocation2 + $0x508] ss:$16 sps:$4 sm:$0xff]  }
  0x7c   :  { %1294 = vmatpush1.bf16.msra.mxu0 %v2389_v51  ;;  %1466 = vmatpush1.bf16.msra.mxu1 %v2392_v52  ;;  %v2481_v51 = vld [vmem:[#allocation2 + $0x524] ss:$16 sps:$4 sm:$0xff]   ;;  %v2484_v52 = vld [vmem:[#allocation2 + $0x52c] ss:$16 sps:$4 sm:$0xff]  }
  0x7d   :  { %1295 = vmatprep.subr.bf16.mxu0 %v2397_v53  ;;  %1467 = vmatprep.subr.bf16.mxu1 %v2400_v54  ;;  %v2479_v53 = vld [vmem:[#allocation2 + $0x520] ss:$16 sps:$4 sm:$0xff]   ;;  %v2482_v54 = vld [vmem:[#allocation2 + $0x528] ss:$16 sps:$4 sm:$0xff]  }
  0x80   :  { %1296 = vmatpush1.bf16.msra.mxu0 %v2395_v55  ;;  %1468 = vmatpush1.bf16.msra.mxu1 %v2398_v56  ;;  %v2487_v55 = vld [vmem:[#allocation2 + $0x544] ss:$16 sps:$4 sm:$0xff]   ;;  %v2490_v56 = vld [vmem:[#allocation2 + $0x54c] ss:$16 sps:$4 sm:$0xff]  }
  0x81   :  { %1297 = vmatprep.subr.bf16.mxu0 %v2403_v57  ;;  %1469 = vmatprep.subr.bf16.mxu1 %v2406_v58  ;;  %v2485_v57 = vld [vmem:[#allocation2 + $0x540] ss:$16 sps:$4 sm:$0xff]   ;;  %v2488_v58 = vld [vmem:[#allocation2 + $0x548] ss:$16 sps:$4 sm:$0xff]  }
  0x84   :  { %1298 = vmatpush1.bf16.msra.mxu0 %v2401_v59  ;;  %1470 = vmatpush1.bf16.msra.mxu1 %v2404_v60  ;;  %v2493_v59 = vld [vmem:[#allocation2 + $0x564] ss:$16 sps:$4 sm:$0xff]   ;;  %v2496_v60 = vld [vmem:[#allocation2 + $0x56c] ss:$16 sps:$4 sm:$0xff]  }
  0x85   :  { %1299 = vmatprep.subr.bf16.mxu0 %v2409_v61  ;;  %1471 = vmatprep.subr.bf16.mxu1 %v2412_v62  ;;  %v2491_v61 = vld [vmem:[#allocation2 + $0x560] ss:$16 sps:$4 sm:$0xff]   ;;  %v2494_v62 = vld [vmem:[#allocation2 + $0x568] ss:$16 sps:$4 sm:$0xff]  }
  0x88   :  { %1300 = vmatpush1.bf16.msra.mxu0 %v2407_v63  ;;  %1472 = vmatpush1.bf16.msra.mxu1 %v2410_v0  ;;  %v2499_v63 = vld [vmem:[#allocation2 + $0x584] ss:$16 sps:$4 sm:$0xff]   ;;  %v2502_v0 = vld [vmem:[#allocation2 + $0x58c] ss:$16 sps:$4 sm:$0xff]  }
  0x89   :  { %1301 = vmatprep.subr.bf16.mxu0 %v2415_v1  ;;  %1473 = vmatprep.subr.bf16.mxu1 %v2418_v2  ;;  %v2497_v1 = vld [vmem:[#allocation2 + $0x580] ss:$16 sps:$4 sm:$0xff]   ;;  %v2500_v2 = vld [vmem:[#allocation2 + $0x588] ss:$16 sps:$4 sm:$0xff]  }
  0x8c   :  { %1302 = vmatpush1.bf16.msra.mxu0 %v2413_v3  ;;  %1474 = vmatpush1.bf16.msra.mxu1 %v2416_v4  ;;  %v2505_v3 = vld [vmem:[#allocation2 + $0x5a4] ss:$16 sps:$4 sm:$0xff]   ;;  %v2508_v4 = vld [vmem:[#allocation2 + $0x5ac] ss:$16 sps:$4 sm:$0xff]  }
  0x8d   :  { %1303 = vmatprep.subr.bf16.mxu0 %v2421_v5  ;;  %1475 = vmatprep.subr.bf16.mxu1 %v2424_v6  ;;  %v2503_v5 = vld [vmem:[#allocation2 + $0x5a0] ss:$16 sps:$4 sm:$0xff]   ;;  %v2506_v6 = vld [vmem:[#allocation2 + $0x5a8] ss:$16 sps:$4 sm:$0xff]  }
  0x90   :  { %1304 = vmatpush1.bf16.msra.mxu0 %v2419_v7  ;;  %1476 = vmatpush1.bf16.msra.mxu1 %v2422_v8  ;;  %v2511_v7 = vld [vmem:[#allocation2 + $0x5c4] ss:$16 sps:$4 sm:$0xff]   ;;  %v2514_v8 = vld [vmem:[#allocation2 + $0x5cc] ss:$16 sps:$4 sm:$0xff]  }
  0x91   :  { %1316 = vmatprep.subr.bf16.mxu0 %v2427_v9  ;;  %1488 = vmatprep.subr.bf16.mxu1 %v2430_v12  ;;  %v2509_v9 = vld [vmem:[#allocation2 + $0x5c0] ss:$16 sps:$4 sm:$0xff]   ;;  %v2520_v12 = vld [vmem:[#allocation2 + $0x5ec] ss:$16 sps:$4 sm:$0xff]  }
  0x93   :  { %1306 = vmatmul.mubr.bf16.vlgmr.msra.gmra.mrb[0].mxu0 %v45_v15  ;;  %1478 = vmatmul.mubr.bf16.vlgmr.msra.gmra.mrb[0].mxu1 %v45_v15  ;;  %v33_v15 = vld [vmem:[%s2763_s0 + $0x20] sm:$0xff] }
  0x94   :  { %1317 = vmatpush1.bf16.msra.mxu0 %v2425_v13  ;;  %1489 = vmatpush1.bf16.msra.mxu1 %v2428_v14  ;;  %v2515_v13 = vld [vmem:[#allocation2 + $0x5e0] ss:$16 sps:$4 sm:$0xff]   ;;  %v2518_v14 = vld [vmem:[#allocation2 + $0x5e8] ss:$16 sps:$4 sm:$0xff]  }
  0x95   :  { %1318 = vmatprep.subr.bf16.mxu0 %v2433_v16  ;;  %1490 = vmatprep.subr.bf16.mxu1 %v2436_v17  ;;  %v40_v16 = vld [vmem:[%s2763_s0 + $0x58] sm:$0xff]  ;;  %v2523_v17 = vld [vmem:[#allocation2 + $0x604] ss:$16 sps:$4 sm:$0xff]  }
  0x96   :  { %1348 = vmatprep.mubr.bf16.mxu0 %v48_v23  ;;  %1520 = vmatprep.mubr.bf16.mxu1 %v48_v23  ;;  %v2528_v23 = vld [vmem:[%s2765_s2 + $0xc0] sm:$0xff]  }
  0x98   :  { %1319 = vmatpush1.bf16.msra.mxu0 %v2431_v19  ;;  %1491 = vmatpush1.bf16.msra.mxu1 %v2434_v20  ;;  %v47_v19 = vpack.c.bf16 %v40_v16, %v33_v15  ;;  %v2521_v20 = vld [vmem:[#allocation2 + $0x600] ss:$16 sps:$4 sm:$0xff]  }
  0x99   :  { %1320 = vmatprep.subr.bf16.mxu0 %v2439_v22  ;;  %1492 = vmatprep.subr.bf16.mxu1 %v2442_v24  ;;  %v2527_v22 = vld [vmem:[%s2765_s2 + $0x40] sm:$0xff]   ;;  %v2586_v24 = vmov 0  }
  0x9c   :  { %1321 = vmatpush1.bf16.msra.mxu0 %v2437_v25  ;;  %1493 = vmatpush1.bf16.msra.mxu1 %v2440_v26  ;;  %v35_v25 = vld [vmem:[%s2763_s0 + $0x30] sm:$0xff]  ;;  %v42_v26 = vld [vmem:[%s2763_s0 + $0x68] sm:$0xff] }
  0x9d   :  { %1322 = vmatprep.subr.bf16.mxu0 %v2445_v27  ;;  %1494 = vmatprep.subr.bf16.mxu1 %v2448_v28  ;;  %v49_v27 = vpack.c.bf16 %v42_v26, %v35_v25  ;;  %v2529_v28 = vld [vmem:[%s2765_s2] sm:$0xff]  }
  0xa0   :  { %1323 = vmatpush1.bf16.msra.mxu0 %v2443_v29  ;;  %1495 = vmatpush1.bf16.msra.mxu1 %v2446_v30  ;;  %v2530_v29 = vld [vmem:[%s2765_s2 + $0x80] sm:$0xff]   ;;  %v2531_v30 = vld [vmem:[%s2765_s2 + $0x48] sm:$0xff]  }
  0xa1   :  { %1324 = vmatprep.subr.bf16.mxu0 %v2451_v31  ;;  %1496 = vmatprep.subr.bf16.mxu1 %v2454_v32  ;;  %v2532_v31 = vld [vmem:[%s2765_s2 + $0xc8] sm:$0xff]  }
  0xa2   :  { %v2533_v32 = vld [vmem:[%s2765_s2 + $0x8] sm:$0xff]  }
  0xa4   :  { %1325 = vmatpush1.bf16.msra.mxu0 %v2449_v33  ;;  %1497 = vmatpush1.bf16.msra.mxu1 %v2452_v34  ;;  %v2534_v33 = vld [vmem:[%s2765_s2 + $0x88] sm:$0xff]   ;;  %v2535_v34 = vld [vmem:[%s2765_s2 + $0x50] sm:$0xff]  }
  0xa5   :  { %1326 = vmatprep.subr.bf16.mxu0 %v2457_v35  ;;  %1498 = vmatprep.subr.bf16.mxu1 %v2460_v36  ;;  %v2536_v35 = vld [vmem:[%s2765_s2 + $0xd0] sm:$0xff]  }
  0xa6   :  { %v2537_v36 = vld [vmem:[%s2765_s2 + $0x10] sm:$0xff]  }
  0xa8   :  { %1327 = vmatpush1.bf16.msra.mxu0 %v2455_v37  ;;  %1499 = vmatpush1.bf16.msra.mxu1 %v2458_v38  ;;  %v2538_v37 = vld [vmem:[%s2765_s2 + $0x90] sm:$0xff]   ;;  %v2539_v38 = vld [vmem:[%s2765_s2 + $0x58] sm:$0xff]  }
  0xa9   :  { %1328 = vmatprep.subr.bf16.mxu0 %v2463_v39  ;;  %1500 = vmatprep.subr.bf16.mxu1 %v2466_v40  ;;  %v2540_v39 = vld [vmem:[%s2765_s2 + $0xd8] sm:$0xff]  }
  0xaa   :  { %v2541_v40 = vld [vmem:[%s2765_s2 + $0x18] sm:$0xff]  }
  0xac   :  { %1329 = vmatpush1.bf16.msra.mxu0 %v2461_v41  ;;  %1501 = vmatpush1.bf16.msra.mxu1 %v2464_v42  ;;  %v2542_v41 = vld [vmem:[%s2765_s2 + $0x98] sm:$0xff]   ;;  %v2543_v42 = vld [vmem:[%s2765_s2 + $0x60] sm:$0xff]  }
  0xad   :  { %1330 = vmatprep.subr.bf16.mxu0 %v2469_v43  ;;  %1502 = vmatprep.subr.bf16.mxu1 %v2472_v44  ;;  %v2544_v43 = vld [vmem:[%s2765_s2 + $0xe0] sm:$0xff]  }
  0xae   :  { %v2545_v44 = vld [vmem:[%s2765_s2 + $0x20] sm:$0xff]  }
  0xb0   :  { %1331 = vmatpush1.bf16.msra.mxu0 %v2467_v45  ;;  %1503 = vmatpush1.bf16.msra.mxu1 %v2470_v46  ;;  %v2546_v45 = vld [vmem:[%s2765_s2 + $0xa0] sm:$0xff]   ;;  %v2547_v46 = vld [vmem:[%s2765_s2 + $0x68] sm:$0xff]  }
  0xb1   :  { %1332 = vmatprep.subr.bf16.mxu0 %v2475_v47  ;;  %1504 = vmatprep.subr.bf16.mxu1 %v2478_v48  ;;  %v2548_v47 = vld [vmem:[%s2765_s2 + $0xe8] sm:$0xff]  }
  0xb2   :  { %v2549_v48 = vld [vmem:[%s2765_s2 + $0x28] sm:$0xff]  }
  0xb4   :  { %1333 = vmatpush1.bf16.msra.mxu0 %v2473_v49  ;;  %1505 = vmatpush1.bf16.msra.mxu1 %v2476_v50  ;;  %v2550_v49 = vld [vmem:[%s2765_s2 + $0xa8] sm:$0xff]   ;;  %v2551_v50 = vld [vmem:[%s2765_s2 + $0x70] sm:$0xff]  }
  0xb5   :  { %1334 = vmatprep.subr.bf16.mxu0 %v2481_v51  ;;  %1506 = vmatprep.subr.bf16.mxu1 %v2484_v52  ;;  %v2552_v51 = vld [vmem:[%s2765_s2 + $0xf0] sm:$0xff]  }
  0xb6   :  { %v2553_v52 = vld [vmem:[%s2765_s2 + $0x30] sm:$0xff]  }
  0xb8   :  { %1335 = vmatpush1.bf16.msra.mxu0 %v2479_v53  ;;  %1507 = vmatpush1.bf16.msra.mxu1 %v2482_v54  ;;  %v2554_v53 = vld [vmem:[%s2765_s2 + $0xb0] sm:$0xff]   ;;  %v2555_v54 = vld [vmem:[%s2765_s2 + $0x78] sm:$0xff]  }
  0xb9   :  { %1336 = vmatprep.subr.bf16.mxu0 %v2487_v55  ;;  %1508 = vmatprep.subr.bf16.mxu1 %v2490_v56  ;;  %v2556_v55 = vld [vmem:[%s2765_s2 + $0xf8] sm:$0xff]  }
  0xba   :  { %v2557_v56 = vld [vmem:[%s2765_s2 + $0x38] sm:$0xff]  }
  0xbc   :  { %1337 = vmatpush1.bf16.msra.mxu0 %v2485_v57  ;;  %1509 = vmatpush1.bf16.msra.mxu1 %v2488_v58  ;;  %v2558_v57 = vld [vmem:[%s2765_s2 + $0xb8] sm:$0xff]  }
  0xbd   :  { %1338 = vmatprep.subr.bf16.mxu0 %v2493_v59  ;;  %1510 = vmatprep.subr.bf16.mxu1 %v2496_v60 }
  0xc0   :  { %1339 = vmatpush1.bf16.msra.mxu0 %v2491_v61  ;;  %1511 = vmatpush1.bf16.msra.mxu1 %v2494_v62 }
  0xc1   :  { %1340 = vmatprep.subr.bf16.mxu0 %v2499_v63  ;;  %1512 = vmatprep.subr.bf16.mxu1 %v2502_v0 }
  0xc4   :  { %1341 = vmatpush1.bf16.msra.mxu0 %v2497_v1  ;;  %1513 = vmatpush1.bf16.msra.mxu1 %v2500_v2 }
  0xc5   :  { %1342 = vmatprep.subr.bf16.mxu0 %v2505_v3  ;;  %1514 = vmatprep.subr.bf16.mxu1 %v2508_v4 }
  0xc8   :  { %1343 = vmatpush1.bf16.msra.mxu0 %v2503_v5  ;;  %1515 = vmatpush1.bf16.msra.mxu1 %v2506_v6 }
  0xc9   :  { %1344 = vmatprep.subr.bf16.mxu0 %v2511_v7  ;;  %1516 = vmatprep.subr.bf16.mxu1 %v2514_v8 }
  0xcc   :  { %1345 = vmatpush1.bf16.msra.mxu0 %v2509_v9  ;;  %1517 = vmatpush1.bf16.msra.mxu1 %v2512_v10 }
  0xcd   :  { %1346 = vmatprep.subr.bf16.mxu0 %v2517_v11  ;;  %1518 = vmatprep.subr.bf16.mxu1 %v2520_v12 }
  0xd0   :  { %1347 = vmatpush1.bf16.msra.mxu0 %v2515_v13  ;;  %1519 = vmatpush1.bf16.msra.mxu1 %v2518_v14 }
  0xd1   :  { %1359 = vmatprep.subr.bf16.mxu0 %v2523_v17  ;;  %1531 = vmatprep.subr.bf16.mxu1 %v2526_v18 }
  0xd3   :  { %1349 = vmatmul.mubr.bf16.vlgmr.msra.gmra.mrb[0].mxu0 %v47_v19  ;;  %1521 = vmatmul.mubr.bf16.vlgmr.msra.gmra.mrb[0].mxu1 %v47_v19 }
  0xd4   :  { %1360 = vmatpush1.bf16.msra.mxu0 %v2521_v20  ;;  %1532 = vmatpush1.bf16.msra.mxu1 %v2524_v21 }
  0xd5   :  { %1391 = vmatprep.mubr.bf16.mxu0 %v2586_v24  ;;  %1563 = vmatprep.mubr.bf16.mxu1 %v2586_v24 }
  0xd6   :  { %2161 = vmatprep.subr.bf16.mxu0 %v2527_v22  ;;  %2183 = vmatprep.subr.bf16.mxu1 %v2528_v23 }
  0xdf   :  { %2127 = vmatmul.mubr.msk.bf16.vlgmr.msra.gmra.mrb[0].mxu0 %vm1226_vm0, %v49_v27  ;;  %2128 = vmatmul.mubr.msk.bf16.vlgmr.msra.gmra.mrb[0].mxu1 %vm1226_vm0, %v49_v27 }
  0xe0   :  { %2162 = vmatpush3.bf16.msra.mxu0 %v2529_v28  ;;  %2184 = vmatpush3.bf16.msra.mxu1 %v2530_v29 }
  0xe1   :  { %2163 = vmatprep.subr.bf16.mxu0 %v2531_v30  ;;  %2185 = vmatprep.subr.bf16.mxu1 %v2532_v31 }
  0xe4   :  { %2164 = vmatpush3.bf16.msra.mxu0 %v2533_v32  ;;  %2186 = vmatpush3.bf16.msra.mxu1 %v2534_v33 }
  0xe5   :  { %2165 = vmatprep.subr.bf16.mxu0 %v2535_v34  ;;  %2187 = vmatprep.subr.bf16.mxu1 %v2536_v35 }
  0xe8   :  { %2166 = vmatpush3.bf16.msra.mxu0 %v2537_v36  ;;  %2188 = vmatpush3.bf16.msra.mxu1 %v2538_v37 }
  0xe9   :  { %2167 = vmatprep.subr.bf16.mxu0 %v2539_v38  ;;  %2189 = vmatprep.subr.bf16.mxu1 %v2540_v39 }
  0xec   :  { %2168 = vmatpush3.bf16.msra.mxu0 %v2541_v40  ;;  %2190 = vmatpush3.bf16.msra.mxu1 %v2542_v41 }
  0xed   :  { %2169 = vmatprep.subr.bf16.mxu0 %v2543_v42  ;;  %2191 = vmatprep.subr.bf16.mxu1 %v2544_v43 }
  0xf0   :  { %2170 = vmatpush3.bf16.msra.mxu0 %v2545_v44  ;;  %2192 = vmatpush3.bf16.msra.mxu1 %v2546_v45 }
  0xf1   :  { %2171 = vmatprep.subr.bf16.mxu0 %v2547_v46  ;;  %2193 = vmatprep.subr.bf16.mxu1 %v2548_v47 }
  0xf4   :  { %2172 = vmatpush3.bf16.msra.mxu0 %v2549_v48  ;;  %2194 = vmatpush3.bf16.msra.mxu1 %v2550_v49 }
  0xf5   :  { %2173 = vmatprep.subr.bf16.mxu0 %v2551_v50  ;;  %2195 = vmatprep.subr.bf16.mxu1 %v2552_v51 }
  0xf8   :  { %2174 = vmatpush3.bf16.msra.mxu0 %v2553_v52  ;;  %2196 = vmatpush3.bf16.msra.mxu1 %v2554_v53 }
  0xf9   :  { %2175 = vmatprep.subr.bf16.mxu0 %v2555_v54  ;;  %2197 = vmatprep.subr.bf16.mxu1 %v2556_v55 }
  0xfc   :  { %2176 = vmatpush3.bf16.msra.mxu0 %v2557_v56  ;;  %2198 = vmatpush3.bf16.msra.mxu1 %v2558_v57 }
 0x1b2   :  { %v1393_v58 = vpop.f32.mrb[0].mxu0  ;;  %v1565_v59 = vpop.f32.mrb[0].mxu1 }
 0x1b3   :  { %v1395_v60 = vpop.f32.mrb[1].mxu0  ;;  %v1567_v61 = vpop.f32.mrb[1].mxu1  ;;  %v1574_v0 = vmax.f32 %v1393_v58, 0.0  ;;  %v1576_v1 = vmax.f32 %v1565_v59, 0.0 }
 0x1b4   :  { %v1397_v62 = vpop.f32.mrb[2].mxu0  ;;  %v1569_v63 = vpop.f32.mrb[2].mxu1  ;;  %v1575_v6 = vmax.f32 %v1395_v60, 0.0  ;;  %v1577_v7 = vmax.f32 %v1567_v61, 0.0 }
 0x1b5   :  { %v1578_v2 = vmax.f32 %v1397_v62, 0.0  ;;  %v1580_v3 = vmax.f32 %v1569_v63, 0.0  ;;  %v1399_v4 = vpop.f32.mrb[3].mxu0  ;;  %v1571_v5 = vpop.f32.mrb[3].mxu1 }
 0x1b6   :  { %v1579_v8 = vmax.f32 %v1399_v4, 0.0  ;;  %v1581_v9 = vmax.f32 %v1571_v5, 0.0 }
 0x1b7   :  { %v1582_v10 = vpack.c.bf16 %v1578_v2, %v1574_v0  ;;  %v1584_v11 = vpack.c.bf16 %v1580_v3, %v1576_v1 }
 0x1b8   :  { %v1583_v12 = vpack.c.bf16 %v1579_v8, %v1575_v6  ;;  %v1585_v13 = vpack.c.bf16 %v1581_v9, %v1577_v7 }
 0x1ba   :  { %1874 = vmatprep.mubr.bf16.mxu0 %v1583_v12  ;;  %1915 = vmatprep.mubr.bf16.mxu1 %v1585_v13 }
 0x1bb   :  { %1875 = vmatmul.mubr.bf16.vlgmr.msra.gmra.mrb[4].mxu0 %v1582_v10  ;;  %1916 = vmatmul.mubr.bf16.vlgmr.msra.gmra.mrb[4].mxu1 %v1584_v11 }
 0x28e   :  { %v2177_v14 = vpop.f32.mrb[4].mxu0  ;;  %v2199_v15 = vpop.f32.mrb[4].mxu1 }
 0x28f   :  { %v2178_v16 = vpop.f32.mrb[5].mxu0  ;;  %v2200_v17 = vpop.f32.mrb[5].mxu1 }
 0x290   :  { %v2179_v18 = vadd.f32 %v2178_v16, %v2177_v14  ;;  %v2201_v19 = vadd.f32 %v2200_v17, %v2199_v15  ;;  %v2180_v20 = vpop.f32.mrb[6].mxu0  ;;  %v2202_v21 = vpop.f32.mrb[6].mxu1 }
 0x291   :  { %v2181_v22 = vpop.f32.mrb[7].mxu0  ;;  %v2203_v23 = vpop.f32.mrb[7].mxu1 }
 0x292   :  { %v1918_v24 = vadd.f32 %v2201_v19, %v2179_v18  ;;  %v2182_v25 = vadd.f32 %v2181_v22, %v2180_v20  ;;  %v2204_v26 = vadd.f32 %v2203_v23, %v2202_v21 }
 0x294   :  { %1924 = vst [vmem:[%s2766_s3] sm:$0xff] %v1918_v24  ;;  %v1921_v27 = vadd.f32 %v2204_v26, %v2182_v25 }
 0x296   :  { %1925 = vst [vmem:[%s2766_s3 + $0x8] sm:$0xff] %v1921_v27 }
 0x297   :  { %1930 = vsyncpa [#allocation3], 1 }

</bundles_post_ra>
